<compile_context>
chip_gen: v7x
topology: tpu7x:2x2x1
jax: 0.10.0
libtpu: 0.0.40
codegen_flags: <defaults>
</compile_context>

<pallas_src>
import jax
import jax.numpy as jnp
from jax.experimental import pallas as pl
from jax.experimental.pallas import tpu as pltpu


# -----------------------------------------------------------------------------
# Fused kernel: all branches + running max over point tiles, one batch per b.
# -----------------------------------------------------------------------------
def _make_fused_kernel(branch_num_layers, branch_offsets, branch_widths,
                       n_valid, tn, needs_mask):
    def kernel(x_ref, *refs):
        out_ref = refs[-1]                      # (C_total, 1), resident over k
        wb = refs[:-1]                          # w0, b0, w1, b1, ... flattened
        k = pl.program_id(1)

        @pl.when(k == 0)
        def _init():
            # Post-ReLU activations are >= 0, so 0 is a valid max identity.
            out_ref[...] = jnp.zeros_like(out_ref)

        x = x_ref[...]                          # (C_in, tn) bf16
        idx = 0
        for bi, n_layers in enumerate(branch_num_layers):
            h = x
            acc = None
            for layer in range(n_layers):
                w = wb[idx][...]                # (c_out_l, c_in_l) bf16
                b = wb[idx + 1][...]            # (c_out_l, 1)      f32
                idx += 2
                acc = jnp.dot(w, h, preferred_element_type=jnp.float32)
                acc = jnp.maximum(acc + b, 0.0)          # bias + ReLU in f32
                if layer + 1 < n_layers:
                    h = acc.astype(jnp.bfloat16)         # MXU-native next layer
            if needs_mask:
                # Zero out padded points; safe because ReLU output >= 0.
                lane = jax.lax.broadcasted_iota(jnp.int32, acc.shape, 1)
                valid = (k * tn + lane) < n_valid
                acc = jnp.where(valid, acc, 0.0)
            tile_max = jnp.max(acc, axis=-1, keepdims=True)   # (c_out, 1)
            off = branch_offsets[bi]
            cb = branch_widths[bi]
            out_ref[off:off + cb, :] = jnp.maximum(out_ref[off:off + cb, :],
                                                   tile_max)

    return kernel


def _run_fused(x, branches):
    """x: (B, C_in, N) bf16. branches: list of (weights, biases) with
    weights[l]: (c_out_l, c_in_l) bf16 and biases[l]: (c_out_l, 1) f32.
    Returns (B, sum(branch final c_out), 1) float32."""
    B, C, N = x.shape

    # Point-axis tiling: lane-dense 512-wide tiles for large N; otherwise a
    # single full-extent tile (block == full dim satisfies the (8,128) rule).
    if N <= 512:
        tn, n_pad = N, N
    else:
        tn = 512
        n_pad = ((N + tn - 1) // tn) * tn
    needs_mask = n_pad != N
    if needs_mask:
        x = jnp.pad(x, ((0, 0), (0, 0), (0, n_pad - N)))
    n_tiles = n_pad // tn

    branch_num_layers = [len(ws) for ws, _ in branches]
    branch_widths = [ws[-1].shape[0] for ws, _ in branches]
    branch_offsets, off = [], 0
    for w_ in branch_widths:
        branch_offsets.append(off)
        off += w_
    c_total = off

    in_specs = [pl.BlockSpec((None, C, tn), lambda b, k: (b, 0, k))]
    args = [x]
    for weights, biases in branches:
        for w, bias in zip(weights, biases):
            # Grid-invariant index maps: fetched once, kept resident in VMEM.
            in_specs.append(pl.BlockSpec(w.shape, lambda b, k: (0, 0)))
            in_specs.append(pl.BlockSpec(bias.shape, lambda b, k: (0, 0)))
            args.append(w)
            args.append(bias)

    kernel = _make_fused_kernel(branch_num_layers, branch_offsets,
                                branch_widths, N, tn, needs_mask)

    return pl.pallas_call(
        kernel,
        out_shape=jax.ShapeDtypeStruct((B, c_total, 1), jnp.float32),
        grid_spec=pltpu.PrefetchScalarGridSpec(
            num_scalar_prefetch=0,
            grid=(B, n_tiles),
            in_specs=in_specs,
            out_specs=pl.BlockSpec((None, c_total, 1), lambda b, k: (b, 0, 0)),
        ),
        compiler_params=pltpu.CompilerParams(
            dimension_semantics=("parallel", "arbitrary"),
            vmem_limit_bytes=32 * 1024 * 1024,
        ),
    )(*args)


# -----------------------------------------------------------------------------
# Module wrapper (parameter setup + glue in plain JAX)
# -----------------------------------------------------------------------------
class PointNetAModulePallas:
    def __init__(self, in_channels, out_channels, include_coordinates=True,
                 key=jax.random.PRNGKey(0)):
        # Normalize out_channels exactly like the PyTorch module.
        if not isinstance(out_channels, (list, tuple)):
            out_channels = [[out_channels]]
        elif not isinstance(out_channels[0], (list, tuple)):
            out_channels = [out_channels]

        self.include_coordinates = include_coordinates
        self.out_channels = sum(oc[-1] for oc in out_channels)

        c_in0 = in_channels + (3 if include_coordinates else 0)
        eps = 1e-5

        # Deterministic synthetic parameters; BatchNorm folded (eval mode).
        # Weights kept as (c_out, c_in) so Conv1d(k=1) is W @ x in NCL layout.
        self.branches = []          # list of (weights, biases) per SharedMLP
        for branch_oc in out_channels:
            weights, biases = [], []
            c_in = c_in0
            for c_out in branch_oc:
                key, kw, kb, kg, kbeta = jax.random.split(key, 5)
                conv_w = 0.1 * jax.random.normal(kw, (c_out, c_in), jnp.float32)
                conv_b = 0.1 * jax.random.normal(kb, (c_out,), jnp.float32)
                gamma = 1.0 + 0.1 * jax.random.normal(kg, (c_out,), jnp.float32)
                beta = 0.1 * jax.random.normal(kbeta, (c_out,), jnp.float32)
                run_mean = jnp.zeros((c_out,), jnp.float32)
                run_var = jnp.ones((c_out,), jnp.float32)

                scale = gamma / jnp.sqrt(run_var + eps)                 # (c_out,)
                w_folded = (conv_w * scale[:, None]).astype(jnp.bfloat16)
                b_folded = ((conv_b - run_mean) * scale + beta)[:, None]  # f32
                weights.append(w_folded)
                biases.append(b_folded)
                c_in = c_out
            self.branches.append((weights, biases))

    def __call__(self, inputs):
        features, coords = inputs                     # (B, C, N), (B, 3, N)
        if self.include_coordinates:
            features = jnp.concatenate([features, coords], axis=1)
        B = coords.shape[0]
        coords_out = jnp.zeros((B, 3, 1), jnp.float32)
        x = features.astype(jnp.bfloat16)             # native NCL, no transpose
        feat_out = _run_fused(x, self.branches)       # (B, C_out_total, 1)
        return feat_out, coords_out

    # Pure-JAX reference (same folded bf16 parameters) for verification.
    def reference(self, inputs):
        features, coords = inputs
        if self.include_coordinates:
            features = jnp.concatenate([features, coords], axis=1)
        B = coords.shape[0]
        coords_out = jnp.zeros((B, 3, 1), jnp.float32)
        x = features.astype(jnp.bfloat16)
        outs = []
        for weights, biases in self.branches:
            h = x
            acc = None
            for l, (w, b) in enumerate(zip(weights, biases)):
                acc = jnp.einsum("oc,bcn->bon", w, h,
                                 preferred_element_type=jnp.float32)
                acc = jnp.maximum(acc + b, 0.0)
                if l + 1 < len(weights):
                    h = acc.astype(jnp.bfloat16)
            outs.append(jnp.max(acc, axis=-1, keepdims=True))   # (B, c_out, 1)
        feat_out = jnp.concatenate(outs, axis=1) if len(outs) > 1 else outs[0]
        return feat_out, coords_out


if __name__ == "__main__":
    key = jax.random.PRNGKey(0)
    k_feat, k_coord, k_param = jax.random.split(key, 3)

    B, C_in, N = 2, 4, 16
    features = jax.random.normal(k_feat, (B, C_in, N), jnp.float32)
    coords = jax.random.normal(k_coord, (B, 3, N), jnp.float32)

    # Two-branch SharedMLP config: [[16, 32], [32]] -> total out channels = 64
    module = PointNetAModulePallas(
        in_channels=C_in,
        out_channels=[[16, 32], [32]],
        include_coordinates=True,
        key=k_param,
    )

    feat_out, coords_out = module((features, coords))
    jax.block_until_ready(feat_out)
    jax.block_until_ready(coords_out)

    ref_feat, ref_coords = module.reference((features, coords))
    assert feat_out.shape == (B, module.out_channels, 1), feat_out.shape
    assert coords_out.shape == (B, 3, 1), coords_out.shape
    assert jnp.allclose(feat_out, ref_feat, atol=5e-3, rtol=5e-3), (
        float(jnp.max(jnp.abs(feat_out - ref_feat))))
    assert jnp.allclose(coords_out, ref_coords)

    print("KERNEL_OK")
</pallas_src>

<mosaic_0001>
module attributes {stable_mosaic.version = 11 : i64} {
  func.func @kernel(%arg0: i32, %arg1: i32, %arg2: memref<1x7x16xbf16, #tpu.memory_space<vmem>>, %arg3: memref<16x7xbf16, #tpu.memory_space<vmem>>, %arg4: memref<16x1xf32, #tpu.memory_space<vmem>>, %arg5: memref<32x16xbf16, #tpu.memory_space<vmem>>, %arg6: memref<32x1xf32, #tpu.memory_space<vmem>>, %arg7: memref<32x7xbf16, #tpu.memory_space<vmem>>, %arg8: memref<32x1xf32, #tpu.memory_space<vmem>>, %arg9: memref<1x64x1xf32, #tpu.memory_space<vmem>>) attributes {dimension_semantics = [#tpu.dimension_semantics<parallel>, #tpu.dimension_semantics<arbitrary>], iteration_bounds = array<i64: 2, 1>, scalar_prefetch = 0 : i64, scratch_operands = 0 : i64, tpu.core_type = #tpu.core_type<tc>, window_params = [{transform_indices = @transform_0, window_bounds = array<i64: 1, 7, 16>}, {pipeline_mode = #tpu.pipeline_mode<synchronous>, transform_indices = @transform_1, window_bounds = array<i64: 16, 7>}, {pipeline_mode = #tpu.pipeline_mode<synchronous>, transform_indices = @transform_2, window_bounds = array<i64: 16, 1>}, {pipeline_mode = #tpu.pipeline_mode<synchronous>, transform_indices = @transform_3, window_bounds = array<i64: 32, 16>}, {pipeline_mode = #tpu.pipeline_mode<synchronous>, transform_indices = @transform_4, window_bounds = array<i64: 32, 1>}, {pipeline_mode = #tpu.pipeline_mode<synchronous>, transform_indices = @transform_5, window_bounds = array<i64: 32, 7>}, {pipeline_mode = #tpu.pipeline_mode<synchronous>, transform_indices = @transform_6, window_bounds = array<i64: 32, 1>}, {transform_indices = @transform_7, window_bounds = array<i64: 1, 64, 1>}]} {
    %c0_i32 = arith.constant 0 : i32
    %0 = arith.cmpi eq, %arg1, %c0_i32 : i32
    %1 = arith.extui %0 : i1 to i32
    %c0_i32_0 = arith.constant 0 : i32
    %2 = arith.cmpi ne, %1, %c0_i32_0 : i32
    scf.if %2 {
      %cst_33 = arith.constant 0.000000e+00 : f32
      %43 = vector.broadcast %cst_33 : f32 to vector<64x1xf32>
      %c0_34 = arith.constant 0 : index
      %c0_35 = arith.constant 0 : index
      %c0_36 = arith.constant 0 : index
      %44 = vector.load %arg9[%c0_34, %c0_35, %c0_36] : memref<1x64x1xf32, #tpu.memory_space<vmem>>, vector<1x64x1xf32>
      %45 = vector.shape_cast %44 : vector<1x64x1xf32> to vector<64x1xf32>
      %46 = vector.shape_cast %43 : vector<64x1xf32> to vector<1x64x1xf32>
      tpu.vector_store %arg9[%c0_34, %c0_35, %c0_36], %46 {strides = array<i32>} : memref<1x64x1xf32, #tpu.memory_space<vmem>>, vector<1x64x1xf32>,
    } else {
    }
    %c0 = arith.constant 0 : index
    %c0_1 = arith.constant 0 : index
    %c0_2 = arith.constant 0 : index
    %3 = vector.load %arg2[%c0, %c0_1, %c0_2] : memref<1x7x16xbf16, #tpu.memory_space<vmem>>, vector<1x7x16xbf16>
    %4 = vector.shape_cast %3 : vector<1x7x16xbf16> to vector<7x16xbf16>
    %c0_3 = arith.constant 0 : index
    %c0_4 = arith.constant 0 : index
    %5 = vector.load %arg3[%c0_3, %c0_4] : memref<16x7xbf16, #tpu.memory_space<vmem>>, vector<16x7xbf16>
    %c0_5 = arith.constant 0 : index
    %c0_6 = arith.constant 0 : index
    %6 = vector.load %arg4[%c0_5, %c0_6] : memref<16x1xf32, #tpu.memory_space<vmem>>, vector<16x1xf32>
    %cst = arith.constant dense<0.000000e+00> : vector<16x16xf32>
    %7 = tpu.matmul %5, %4, %cst {dimension_numbers = #tpu.dot_dimension_numbers<[1], [0], [0], [1], [0, 0, 1, 1], [], []>} : vector<16x7xbf16>, vector<7x16xbf16>, vector<16x16xf32> -> vector<16x16xf32>
    %8 = vector.broadcast %6 : vector<16x1xf32> to vector<16x16xf32>
    %9 = arith.addf %7, %8 : vector<16x16xf32>
    %cst_7 = arith.constant 0.000000e+00 : f32
    %10 = vector.broadcast %cst_7 : f32 to vector<16x16xf32>
    %11 = arith.maximumf %9, %10 : vector<16x16xf32>
    %12 = arith.truncf %11 : vector<16x16xf32> to vector<16x16xbf16>
    %c0_8 = arith.constant 0 : index
    %c0_9 = arith.constant 0 : index
    %13 = vector.load %arg5[%c0_8, %c0_9] : memref<32x16xbf16, #tpu.memory_space<vmem>>, vector<32x16xbf16>
    %c0_10 = arith.constant 0 : index
    %c0_11 = arith.constant 0 : index
    %14 = vector.load %arg6[%c0_10, %c0_11] : memref<32x1xf32, #tpu.memory_space<vmem>>, vector<32x1xf32>
    %cst_12 = arith.constant dense<0.000000e+00> : vector<32x16xf32>
    %15 = tpu.matmul %13, %12, %cst_12 {dimension_numbers = #tpu.dot_dimension_numbers<[1], [0], [0], [1], [0, 0, 1, 1], [], []>} : vector<32x16xbf16>, vector<16x16xbf16>, vector<32x16xf32> -> vector<32x16xf32>
    %16 = vector.broadcast %14 : vector<32x1xf32> to vector<32x16xf32>
    %17 = arith.addf %15, %16 : vector<32x16xf32>
    %cst_13 = arith.constant 0.000000e+00 : f32
    %18 = vector.broadcast %cst_13 : f32 to vector<32x16xf32>
    %19 = arith.maximumf %17, %18 : vector<32x16xf32>
    %cst_14 = arith.constant dense<0xFF800000> : vector<32xf32>
    %20 = vector.multi_reduction <maximumf>, %19, %cst_14 [1] : vector<32x16xf32> to vector<32xf32>
    %21 = vector.shape_cast %20 : vector<32xf32> to vector<32x1xf32>
    %c0_15 = arith.constant 0 : index
    %c0_16 = arith.constant 0 : index
    %c0_17 = arith.constant 0 : index
    %22 = vector.load %arg9[%c0_15, %c0_16, %c0_17] : memref<1x64x1xf32, #tpu.memory_space<vmem>>, vector<1x32x1xf32>
    %23 = vector.shape_cast %22 : vector<1x32x1xf32> to vector<32x1xf32>
    %24 = arith.maximumf %23, %21 : vector<32x1xf32>
    %c0_18 = arith.constant 0 : index
    %c0_19 = arith.constant 0 : index
    %c0_20 = arith.constant 0 : index
    %25 = vector.load %arg9[%c0_18, %c0_19, %c0_20] : memref<1x64x1xf32, #tpu.memory_space<vmem>>, vector<1x32x1xf32>
    %26 = vector.shape_cast %25 : vector<1x32x1xf32> to vector<32x1xf32>
    %27 = vector.shape_cast %24 : vector<32x1xf32> to vector<1x32x1xf32>
    tpu.vector_store %arg9[%c0_18, %c0_19, %c0_20], %27 {strides = array<i32>} : memref<1x64x1xf32, #tpu.memory_space<vmem>>, vector<1x32x1xf32>,
    %c0_21 = arith.constant 0 : index
    %c0_22 = arith.constant 0 : index
    %28 = vector.load %arg7[%c0_21, %c0_22] : memref<32x7xbf16, #tpu.memory_space<vmem>>, vector<32x7xbf16>
    %c0_23 = arith.constant 0 : index
    %c0_24 = arith.constant 0 : index
    %29 = vector.load %arg8[%c0_23, %c0_24] : memref<32x1xf32, #tpu.memory_space<vmem>>, vector<32x1xf32>
    %cst_25 = arith.constant dense<0.000000e+00> : vector<32x16xf32>
    %30 = tpu.matmul %28, %4, %cst_25 {dimension_numbers = #tpu.dot_dimension_numbers<[1], [0], [0], [1], [0, 0, 1, 1], [], []>} : vector<32x7xbf16>, vector<7x16xbf16>, vector<32x16xf32> -> vector<32x16xf32>
    %31 = vector.broadcast %29 : vector<32x1xf32> to vector<32x16xf32>
    %32 = arith.addf %30, %31 : vector<32x16xf32>
    %cst_26 = arith.constant 0.000000e+00 : f32
    %33 = vector.broadcast %cst_26 : f32 to vector<32x16xf32>
    %34 = arith.maximumf %32, %33 : vector<32x16xf32>
    %cst_27 = arith.constant dense<0xFF800000> : vector<32xf32>
    %35 = vector.multi_reduction <maximumf>, %34, %cst_27 [1] : vector<32x16xf32> to vector<32xf32>
    %36 = vector.shape_cast %35 : vector<32xf32> to vector<32x1xf32>
    %c0_28 = arith.constant 0 : index
    %c32 = arith.constant 32 : index
    %c0_29 = arith.constant 0 : index
    %37 = vector.load %arg9[%c0_28, %c32, %c0_29] : memref<1x64x1xf32, #tpu.memory_space<vmem>>, vector<1x32x1xf32>
    %38 = vector.shape_cast %37 : vector<1x32x1xf32> to vector<32x1xf32>
    %39 = arith.maximumf %38, %36 : vector<32x1xf32>
    %c0_30 = arith.constant 0 : index
    %c32_31 = arith.constant 32 : index
    %c0_32 = arith.constant 0 : index
    %40 = vector.load %arg9[%c0_30, %c32_31, %c0_32] : memref<1x64x1xf32, #tpu.memory_space<vmem>>, vector<1x32x1xf32>
    %41 = vector.shape_cast %40 : vector<1x32x1xf32> to vector<32x1xf32>
    %42 = vector.shape_cast %39 : vector<32x1xf32> to vector<1x32x1xf32>
    tpu.vector_store %arg9[%c0_30, %c32_31, %c0_32], %42 {strides = array<i32>} : memref<1x64x1xf32, #tpu.memory_space<vmem>>, vector<1x32x1xf32>,
    return
  }
  func.func @transform_0(%arg0: i32, %arg1: i32) -> (i32, i32, i32) {
    %c0_i32 = arith.constant 0 : i32
    %c0_i32_0 = arith.constant 0 : i32
    return %arg0, %c0_i32, %arg1 : i32, i32, i32
  }
  func.func @transform_1(%arg0: i32, %arg1: i32) -> (i32, i32) {
    %c0_i32 = arith.constant 0 : i32
    %c0_i32_0 = arith.constant 0 : i32
    %c0_i32_1 = arith.constant 0 : i32
    return %c0_i32, %c0_i32_0 : i32, i32
  }
  func.func @transform_2(%arg0: i32, %arg1: i32) -> (i32, i32) {
    %c0_i32 = arith.constant 0 : i32
    %c0_i32_0 = arith.constant 0 : i32
    %c0_i32_1 = arith.constant 0 : i32
    return %c0_i32, %c0_i32_0 : i32, i32
  }
  func.func @transform_3(%arg0: i32, %arg1: i32) -> (i32, i32) {
    %c0_i32 = arith.constant 0 : i32
    %c0_i32_0 = arith.constant 0 : i32
    %c0_i32_1 = arith.constant 0 : i32
    return %c0_i32, %c0_i32_0 : i32, i32
  }
  func.func @transform_4(%arg0: i32, %arg1: i32) -> (i32, i32) {
    %c0_i32 = arith.constant 0 : i32
    %c0_i32_0 = arith.constant 0 : i32
    %c0_i32_1 = arith.constant 0 : i32
    return %c0_i32, %c0_i32_0 : i32, i32
  }
  func.func @transform_5(%arg0: i32, %arg1: i32) -> (i32, i32) {
    %c0_i32 = arith.constant 0 : i32
    %c0_i32_0 = arith.constant 0 : i32
    %c0_i32_1 = arith.constant 0 : i32
    return %c0_i32, %c0_i32_0 : i32, i32
  }
  func.func @transform_6(%arg0: i32, %arg1: i32) -> (i32, i32) {
    %c0_i32 = arith.constant 0 : i32
    %c0_i32_0 = arith.constant 0 : i32
    %c0_i32_1 = arith.constant 0 : i32
    return %c0_i32, %c0_i32_0 : i32, i32
  }
  func.func @transform_7(%arg0: i32, %arg1: i32) -> (i32, i32, i32) {
    %c0_i32 = arith.constant 0 : i32
    %c0_i32_0 = arith.constant 0 : i32
    %c0_i32_1 = arith.constant 0 : i32
    return %arg0, %c0_i32, %c0_i32_0 : i32, i32, i32
  }
}

</mosaic_0001>

<bundles_post_ra>
// kernel: tpu_custom_call.1
= control target key start
LH: loop header
LB: loop body
LE: loop exit
PB: predicated region body
PF: predicated region fallthrough
CT: control target
= control target key end

     0   :  { %s848_s24 = smov 0   ;;  %s850_s25 = smov 0   ;;  %s985_s0 = inlined_call_operand.vmem [shape: bf16[2,7,16], index: 0, kind: input, shape index: {}]   ;;  %s986_s1 = inlined_call_operand.vmem [shape: bf16[16,7], index: 1, kind: input, shape index: {}]   ;;  %s987_s2 = inlined_call_operand.vmem [shape: f32[16,1], index: 2, kind: input, shape index: {}]   ;;  %s988_s3 = inlined_call_operand.vmem [shape: bf16[32,16], index: 3, kind: input, shape index: {}]   ;;  %s989_s4 = inlined_call_operand.vmem [shape: f32[32,1], index: 4, kind: input, shape index: {}]   ;;  %s990_s5 = inlined_call_operand.vmem [shape: bf16[32,7], index: 5, kind: input, shape index: {}]   ;;  %s991_s6 = inlined_call_operand.vmem [shape: f32[32,1], index: 6, kind: input, shape index: {}]   ;;  %s992_s7 = inlined_call_operand.vmem [shape: f32[2,64,1], index: 7, kind: output, shape index: {}]  }
   0x1   :  { %s852_s26 = smov 0  }
   0x2 LB: > { %s29_s27 = sadd.s32 1, %s798_s25  ;;  %p702_p0 = scmp.ge.s32.totalorder %s802_s26, 1  ;;  %s802_s26 = sphi %s852_s26, %s17_s26   ;;  %s798_s25 = sphi %s850_s25, %s994_s25   ;;  %s794_s24 = sphi %s848_s24, %s993_s24  }
   0x3   : > { %p31_p1 = scmp.ge.s32.totalorder %s29_s27, 2  ;;  %p253_p2 = scmp.lt.s32.totalorder %s802_s26, 3 }
   0x5   : > { %s996_s27 = smov (%p31_p1, %s29_s27), 0  ;;  %p254_p3 = pnand %p702_p0, %p253_p2 }
   0x6   : > { %p287_p4 = scmp.lt.s32.totalorder (!%p254_p3), %s794_s24, 1  ;;  %vm337_vm0 = vcmask (!%p254_p3), 1042432   ;;  %vm338_vm1 = vcmask (!%p254_p3), 1043456   ;;  %v804_v0 = vmov (!%p254_p3), 0.0   ;;  %v805_v1 = vmov (!%p254_p3), 65535   ;;  %v316_v4 = vld [vmem:[%s987_s2] sm:$0xff] (!%p254_p3) }
   0x7   : > { %257 = sbr.rel (%p254_p3) target bundleno = 621 (0x26d), region = 48  ;;  %727 = vmatprep.subr.bf16.mxu0 (!%p254_p3), %v804_v0  ;;  %v339_v2 = vsel (!%p254_p3), %vm337_vm0, 4294967295, %v805_v1  ;;  %vm806_vm2 = vmmov (!%p254_p3), 0   ;;  %v807_v5 = vmov (!%p254_p3), 0   ;;  %v392_v7 = vld [vmem:[%s989_s4] sm:$0xff] (!%p254_p3)  ;;  %v317_v10 = vld [vmem:[%s987_s2 + $0x8] sm:$0xff] (!%p254_p3) }
   0x8   : > { %729 = vmatprep.mubr.msk.bf16.mxu0 (!%p254_p3), %vm806_vm2, %v804_v0  ;;  %v340_v3 = vsel (!%p254_p3), %vm338_vm1, %v339_v2, 0  ;;  %773 = vset.pattern.permute.xlu0 (!%p254_p3), %v807_v5  ;;  %v775_v9 = vld [vmem:[%s986_s1] sm:$0xff] (!%p254_p3)   ;;  %v393_v11 = vld [vmem:[%s989_s4 + $0x8] sm:$0xff] (!%p254_p3)  ;;  %vm333_vm3 = vcmask (!%p254_p3), 56320   ;;  %v394_v13 = vld [vmem:[%s989_s4 + $0x10] sm:$0xff] (!%p254_p3)  ;;  %vm426_vm4 = vcmask (!%p254_p3), 130048  }
   0x9   : > { %774 = vset.pattern.permute.xlu1 (!%p254_p3), %v807_v5  ;;  %320 = vperm.xlu0 (!%p254_p3), %773, %v316_v4   ;;  %v776_v12 = vld [vmem:[%s990_s5] sm:$0xff] (!%p254_p3)   ;;  %v395_v14 = vld [vmem:[%s989_s4 + $0x18] sm:$0xff] (!%p254_p3)  ;;  %v777_v16 = vld [vmem:[%s990_s5 + $0x8] sm:$0xff] (!%p254_p3)   ;;  %vm304_vm5 = vcmask (!%p254_p3), 7168  }
   0xa   : > { %398 = vperm.xlu1 (!%p254_p3), %774, %v392_v7   ;;  %v515_v15 = vld [vmem:[%s991_s6] sm:$0xff] (!%p254_p3)  ;;  %v516_v17 = vld [vmem:[%s991_s6 + $0x8] sm:$0xff] (!%p254_p3)  ;;  %v517_v18 = vld [vmem:[%s991_s6 + $0x10] sm:$0xff] (!%p254_p3) }
   0xb   : > { %v518_v19 = vld [vmem:[%s991_s6 + $0x18] sm:$0xff] (!%p254_p3)  ;;  %v778_v20 = vld [vmem:[%s988_s3] sm:$0xff] (!%p254_p3)   ;;  %v779_v36 = vld [vmem:[%s988_s3 + $0x8] sm:$0xff] (!%p254_p3)  }
   0xc   : > { %735 = vmatprep.mubr.msk.bf16.mxu1 (!%p254_p3), %vm426_vm4, %v778_v20 }
   0xd   : > { %325 = vperm.xlu0 (!%p254_p3), %773, %v317_v10  }
   0xe   : > { %s998_s24 = smov (!%p287_p4, %s794_s24), 1  ;;  %403 = vperm.xlu1 %774, %v393_v11  }
   0xf   : > { %s703_s28 = sshll.u32 %s998_s24, 2  ;;  %s718_s16 = sshll.u32 %s998_s24, 6 }
  0x10   : > { %s293_s10 = scalar_lea.vmem %s985_s0, %s703_s28  ;;  %s922_s21 = scalar_lea.vmem %s992_s7, %s718_s16 }
  0x11   : > { %v313_v6 = vld [vmem:[%s293_s10] sm:$0xf]  ;;  %408 = vperm.xlu0 %773, %v394_v13   ;;  %309 = vst.msk [vmem:[%s922_s21 + $0x20] sm:$0xff] %vm304_vm5, %v804_v0  ;;  %305 = vst.msk [vmem:[%s922_s21] sm:$0xff] %vm304_vm5, %v804_v0 }
  0x12   : > { %v342_v8 = vand.u32 %v340_v3, %v313_v6  ;;  %413 = vperm.xlu1 %774, %v395_v14   ;;  %306 = vst.msk [vmem:[%s922_s21 + $0x8] sm:$0xff] %vm304_vm5, %v804_v0  ;;  %307 = vst.msk [vmem:[%s922_s21 + $0x10] sm:$0xff] %vm304_vm5, %v804_v0 }
  0x13   : > { %308 = vst.msk [vmem:[%s922_s21 + $0x18] sm:$0xff] %vm304_vm5, %v804_v0  ;;  %310 = vst.msk [vmem:[%s922_s21 + $0x28] sm:$0xff] %vm304_vm5, %v804_v0 }
  0x14   : > { %728 = vmatpush3.bf16.msra.mxu0 %v342_v8  ;;  %311 = vst.msk [vmem:[%s922_s21 + $0x30] sm:$0xff] %vm304_vm5, %v804_v0  ;;  %312 = vst.msk [vmem:[%s922_s21 + $0x38] sm:$0xff] %vm304_vm5, %v804_v0 }
  0x15   : > { %739 = vmatprep.subr.bf16.mxu0 %v342_v8  ;;  %521 = vperm.xlu0 %773, %v515_v15  }
  0x16   : > { %526 = vperm.xlu1 %774, %v516_v17  }
  0x17   : > { %730 = vmatmul.mubr.msk.bf16.vlgmr.msra.gmra.mrb[0].mxu0 %vm333_vm3, %v775_v9 }
  0x18   : > { %740 = vmatpush3.bf16.msra.mxu0 %v342_v8  ;;  %741 = vmatprep.mubr.msk.bf16.mxu0 %vm333_vm3, %v776_v12  ;;  %v620_v50 = vld [vmem:[%s922_s21 + $0x20] sm:$0xff] }
  0x19   : > { %531 = vperm.xlu0 %773, %v517_v18   ;;  %v500_v15 = vld [vmem:[%s922_s21 + $0x10] sm:$0xff]  ;;  %v499_v18 = vld [vmem:[%s922_s21 + $0x8] sm:$0xff] }
  0x1a   : > { %536 = vperm.xlu1 %774, %v518_v19   ;;  %v621_v54 = vld [vmem:[%s922_s21 + $0x28] sm:$0xff]  ;;  %v498_v19 = vld [vmem:[%s922_s21] sm:$0xff] }
  0x1f   : > { %742 = vmatmul.mubr.msk.bf16.vlgmr.msra.gmra.mrb[4].mxu0 %vm333_vm3, %v777_v16 }
  0x88   : > { %v321_v21 = vpop.permute.xlu0 %320 }
  0x89   : > { %v399_v40 = vpop.permute.xlu1 %398 }
  0x8c   : > { %v326_v22 = vpop.permute.xlu0 %325 }
  0x8d   : > { %v404_v41 = vpop.permute.xlu1 %403 }
  0x90   : > { %v409_v27 = vpop.permute.xlu0 %408 }
  0x91   : > { %v414_v42 = vpop.permute.xlu1 %413 }
  0x94   : > { %v522_v34 = vpop.permute.xlu0 %521 }
  0x95   : > { %v527_v44 = vpop.permute.xlu1 %526 }
  0x98   : > { %v532_v53 = vpop.permute.xlu0 %531 }
  0x99   : > { %v537_v49 = vpop.permute.xlu1 %536 }
  0xea   : > { %v378_v23 = vpop.f32.mrb[0].mxu0 }
  0xeb   : > { %v379_v24 = vadd.f32 %v378_v23, %v321_v21  ;;  %v731_v25 = vpop.f32.mrb[1].mxu0 }
  0xec   : > { %v381_v26 = vpop.f32.mrb[2].mxu0  ;;  %v501_v25 = vld [vmem:[%s922_s21 + $0x18] sm:$0xff] }
  0xed   : > { %v382_v28 = vadd.f32 %v381_v26, %v326_v22  ;;  %v732_v29 = vpop.f32.mrb[3].mxu0  ;;  %v385_v30 = vmax.f32 %v379_v24, 0.0  ;;  %v622_v24 = vld [vmem:[%s922_s21 + $0x30] sm:$0xff] }
  0xef   : > { %v386_v31 = vmax.f32 %v382_v28, 0.0 }
  0xf1   : > { %v387_v32 = vpack.c.bf16 %v386_v31, %v385_v30  ;;  %v623_v30 = vld [vmem:[%s922_s21 + $0x38] sm:$0xff] }
  0xf2   : > { %v743_v33 = vpop.f32.mrb[4].mxu0 }
  0xf3   : > { %733 = vmatprep.subr.bf16.mxu1 %v387_v32  ;;  %v589_v35 = vpop.f32.mrb[5].mxu0  ;;  %v598_v0 = vadd.f32 %v743_v33, %v532_v53 }
  0xf4   : > { %v590_v37 = vadd.f32 %v589_v35, %v522_v34  ;;  %734 = vmatpush3.bf16.msra.mxu1 %v387_v32  ;;  %v744_v43 = vpop.f32.mrb[6].mxu0 }
  0xf5   : > { %v592_v45 = vpop.f32.mrb[7].mxu0  ;;  %v606_v6 = vmax.f32 %v598_v0, 0.0  ;;  %v601_v8 = vadd.f32 %v744_v43, %v537_v49 }
  0xf6   : > { %v604_v38 = vmax.f32 %v590_v37, 0.0  ;;  %v593_v46 = vadd.f32 %v592_v45, %v527_v44 }
  0xf7   : > { %736 = vmatmul.mubr.msk.bf16.vlgmr.msra.gmra.mrb[0].mxu1 %vm426_vm4, %v779_v36  ;;  %v614_v11 = vsel %vm426_vm4, %v606_v6, -inf  ;;  %v607_v12 = vmax.f32 %v601_v8, 0.0 }
  0xf8   : > { %v608_v39 = vsel %vm426_vm4, %v604_v38, -inf  ;;  %v605_v47 = vmax.f32 %v593_v46, 0.0 }
  0xf9   : > { %609 = vmax.xlane.f32.xlu1 %v608_v39  ;;  %v617_v14 = vsel %vm426_vm4, %v607_v12, -inf }
  0xfa   : > { %v611_v48 = vsel %vm426_vm4, %v605_v47, -inf }
  0xfb   : > { %612 = vmax.xlane.f32.xlu0 %v611_v48 }
 0x186   : > { %v610_v51 = vpop.xlane.xlu1 %609 }
 0x187   : > { %v624_v52 = vmax.f32 %v620_v50, %v610_v51 }
 0x188   : > { %v613_v55 = vpop.xlane.xlu0 %612 }
 0x189   : > { %628 = vst.msk [vmem:[%s922_s21 + $0x20] sm:$0xff] %vm304_vm5, %v624_v52  ;;  %v625_v56 = vmax.f32 %v621_v54, %v613_v55 }
 0x18b   : > { %629 = vst.msk [vmem:[%s922_s21 + $0x28] sm:$0xff] %vm304_vm5, %v625_v56 }
 0x1ca   : > { %v737_v57 = vpop.f32.mrb[0].mxu1 }
 0x1cb   : > { %v476_v58 = vadd.f32 %v737_v57, %v409_v27  ;;  %v467_v59 = vpop.f32.mrb[1].mxu1 }
 0x1cc   : > { %v468_v60 = vadd.f32 %v467_v59, %v399_v40  ;;  %v738_v61 = vpop.f32.mrb[2].mxu1 }
 0x1cd   : > { %v484_v62 = vmax.f32 %v476_v58, 0.0  ;;  %v470_v63 = vpop.f32.mrb[3].mxu1  ;;  %v479_v3 = vadd.f32 %v738_v61, %v414_v42 }
 0x1ce   : > { %v471_v1 = vadd.f32 %v470_v63, %v404_v41  ;;  %v482_v2 = vmax.f32 %v468_v60, 0.0 }
 0x1cf   : > { %v492_v4 = vsel %vm426_vm4, %v484_v62, -inf  ;;  %v485_v9 = vmax.f32 %v479_v3, 0.0 }
 0x1d0   : > { %v483_v5 = vmax.f32 %v471_v1, 0.0  ;;  %493 = vmax.xlane.f32.xlu0 %v492_v4  ;;  %v486_v10 = vsel %vm426_vm4, %v482_v2, -inf }
 0x1d1   : > { %v495_v13 = vsel %vm426_vm4, %v485_v9, -inf }
 0x1d2   : > { %v489_v7 = vsel %vm426_vm4, %v483_v5, -inf }
 0x1d3   : > { %490 = vmax.xlane.f32.xlu1 %v489_v7 }
 0x1d4   : > { %487 = vmax.xlane.f32.xlu0 %v486_v10 }
 0x1d7   : > { %615 = vmax.xlane.f32.xlu1 %v614_v11 }
 0x1d8   : > { %496 = vmax.xlane.f32.xlu0 %v495_v13 }
 0x1dc   : > { %618 = vmax.xlane.f32.xlu0 %v617_v14 }
 0x25d   : > { %v494_v16 = vpop.xlane.xlu0 %493 }
 0x25e   : > { %v504_v17 = vmax.f32 %v500_v15, %v494_v16 }
 0x260   : > { %509 = vst.msk [vmem:[%s922_s21 + $0x10] sm:$0xff] %vm304_vm5, %v504_v17  ;;  %v491_v20 = vpop.xlane.xlu1 %490 }
 0x261   : > { %v503_v21 = vmax.f32 %v499_v18, %v491_v20  ;;  %v488_v22 = vpop.xlane.xlu0 %487 }
 0x262   : > { %v502_v23 = vmax.f32 %v498_v19, %v488_v22 }
 0x263   : > { %508 = vst.msk [vmem:[%s922_s21 + $0x8] sm:$0xff] %vm304_vm5, %v503_v21 }
 0x264   : > { %507 = vst.msk [vmem:[%s922_s21] sm:$0xff] %vm304_vm5, %v502_v23  ;;  %v616_v26 = vpop.xlane.xlu1 %615 }
 0x265   : > { %v626_v27 = vmax.f32 %v622_v24, %v616_v26  ;;  %v497_v28 = vpop.xlane.xlu0 %496 }
 0x266   : > { %v505_v29 = vmax.f32 %v501_v25, %v497_v28 }
 0x267   : > { %630 = vst.msk [vmem:[%s922_s21 + $0x30] sm:$0xff] %vm304_vm5, %v626_v27 }
 0x268   : > { %510 = vst.msk [vmem:[%s922_s21 + $0x18] sm:$0xff] %vm304_vm5, %v505_v29 }
 0x269   : > { %v619_v31 = vpop.xlane.xlu0 %618 }
 0x26a   : > { %v627_v32 = vmax.f32 %v623_v30, %v619_v31 }
 0x26c   : > { %631 = vst.msk [vmem:[%s922_s21 + $0x38] sm:$0xff] %vm304_vm5, %v627_v32 }
 0x26d PF: > { %s17_s26 = sadd.s32 1, %s802_s26   ;;  %s993_s24 = smov %s798_s25 }
 0x26e   : > { %p14_p5 = scmp.ge.s32.totalorder %s17_s26, 4   ;;  %s994_s25 = smov %s996_s27 }
 0x270   :  { %16 = sbr.rel (!%p14_p5) target bundleno = 2 (0x2), region = 82 }

</bundles_post_ra>
